<compile_context>
chip_gen: v7x
topology: tpu7x:2x2x1
jax: 0.10.0
libtpu: 0.0.40
codegen_flags: <defaults>
</compile_context>

<pallas_src>
import functools

import jax
import jax.numpy as jnp
from jax.experimental import pallas as pl
from jax.experimental.pallas import tpu as pltpu


def _round_up(n, m):
    return ((n + m - 1) // m) * m


def _cdiv(a, b):
    return -(-a // b)


# ----------------------------- Pallas kernel ------------------------------ #
def _discriminator_kernel(x_ref, w1_ref, b1_ref, w2_ref, b2_ref, w3_ref, b3_ref,
                          o_ref, *, h1, p1, h2, p2):
    # Transpose once so the batch lives on lanes for every later op.
    xt = x_ref[...].T                                       # (latent, TM)

    # --- Maxout 1: W1 (h1*p1, latent) @ xt, max over pieces (f32 accum) ---- #
    # PyTorch view(-1, pieces, out): piece p occupies output rows
    # [p*h1, (p+1)*h1) -> sublane-aligned row slices here.
    z1 = jnp.dot(w1_ref[...], xt, preferred_element_type=jnp.float32) + b1_ref[...]
    m1 = z1[0:h1, :]
    for p in range(1, p1):
        m1 = jnp.maximum(m1, z1[p * h1:(p + 1) * h1, :])

    # Dropout 1 -> identity (eval mode)

    # --- Maxout 2: W2 (h2*p2, h1) @ m1, max over pieces (f32 accum) -------- #
    z2 = jnp.dot(w2_ref[...], m1.astype(w2_ref.dtype),
                 preferred_element_type=jnp.float32) + b2_ref[...]
    m2 = z2[0:h2, :]
    for p in range(1, p2):
        m2 = jnp.maximum(m2, z2[p * h2:(p + 1) * h2, :])

    # Dropout 2 -> identity (eval mode)

    # --- Final Linear(h2 -> 1) + Sigmoid: lane-dense (1, TM) result -------- #
    logit = jnp.dot(w3_ref[...], m2, preferred_element_type=jnp.float32) + b3_ref[...]
    o_ref[...] = jax.nn.sigmoid(logit).astype(o_ref.dtype)


# ------------------------------ JAX wrapper -------------------------------- #
def discriminator_forward(x, params, config, *, block_rows=4096, use_bf16=False):
    """Eval-mode Discriminator forward.  Returns (batch, 1) float32 probs.

    block_rows: target batch-tile size (rows).  4096 is safe on all
    generations (v7x 64 MiB VMEM included); sweep 4096-8192 on v5e/v6e.
    use_bf16: stream x/w1/w2 as bf16 (halves dominant HBM bytes on v5e/v6e/v7x);
    accumulation, maxout compares and sigmoid stay f32.
    """
    h1 = config["hidden_1"]
    p1 = config["maxout_1_pieces"]
    h2 = config["hidden_2"]
    p2 = config["maxout_2_pieces"]

    w1, b1, w2, b2, w3, b3 = params
    batch, latent = x.shape

    if use_bf16:
        x = x.astype(jnp.bfloat16)
        w1 = w1.astype(jnp.bfloat16)
        w2 = w2.astype(jnp.bfloat16)

    # Batch tile: derived from the batch so tiles are balanced (no 2x-TM
    # padding blowup), multiple of 128 lanes (batch lives on lanes in-kernel
    # and in the output row), even tile count when >1 for v7x megacore split.
    LANE = 128
    cap = max(int(block_rows), LANE)
    num_tiles = _cdiv(batch, cap)
    if num_tiles > 1 and num_tiles % 2 == 1:
        num_tiles += 1
    tm = _round_up(_cdiv(batch, num_tiles), LANE)
    b_pad = num_tiles * tm
    if b_pad != batch:
        x = jnp.pad(x, ((0, b_pad - batch), (0, 0)))

    kernel = functools.partial(_discriminator_kernel, h1=h1, p1=p1, h2=h2, p2=p2)

    x_spec = pl.BlockSpec((tm, latent), lambda i: (i, 0))
    # Lane-dense output: one (1, b_pad) row, each grid step writes a (1, TM)
    # column block -> unmasked-in-lanes stores.
    out_spec = pl.BlockSpec((1, tm), lambda i: (0, i))

    def resident(arr):  # tiny weight, constant block index -> stays in VMEM
        return pl.BlockSpec(arr.shape, lambda i: (0, 0))

    flops = 2 * b_pad * (latent * h1 * p1 + h1 * h2 * p2 + h2)
    bytes_accessed = (int(x.size) * x.dtype.itemsize + b_pad * 4 +
                      sum(int(a.size) * a.dtype.itemsize
                          for a in (w1, b1, w2, b2, w3, b3)))

    out = pl.pallas_call(
        kernel,
        out_shape=jax.ShapeDtypeStruct((1, b_pad), jnp.float32),
        grid=(num_tiles,),
        in_specs=[x_spec,
                  resident(w1), resident(b1),
                  resident(w2), resident(b2),
                  resident(w3), resident(b3)],
        out_specs=out_spec,
        compiler_params=pltpu.CompilerParams(
            dimension_semantics=("parallel",),
            vmem_limit_bytes=48 * 1024 * 1024,
        ),
        cost_estimate=pl.CostEstimate(flops=flops, transcendentals=b_pad,
                                      bytes_accessed=bytes_accessed),
    )(x, w1, b1, w2, b2, w3, b3)

    return out.reshape(-1, 1)[:batch]


# ------------------------- deterministic param init ------------------------ #
def init_params(key, config):
    latent = config["latent_size"]
    h1 = config["hidden_1"]
    p1 = config["maxout_1_pieces"]
    h2 = config["hidden_2"]
    p2 = config["maxout_2_pieces"]

    ks = jax.random.split(key, 6)

    def uniform(k, shape, fan_in):
        bound = 1.0 / jnp.sqrt(jnp.float32(fan_in))
        return jax.random.uniform(k, shape, jnp.float32, -bound, bound)

    # PyTorch-native (out_features, in_features) weights; biases as columns.
    w1 = uniform(ks[0], (h1 * p1, latent), latent)
    b1 = uniform(ks[1], (h1 * p1, 1), latent)
    w2 = uniform(ks[2], (h2 * p2, h1), h1)
    b2 = uniform(ks[3], (h2 * p2, 1), h1)
    w3 = uniform(ks[4], (1, h2), h2)
    b3 = uniform(ks[5], (1, 1), h2)
    return (w1, b1, w2, b2, w3, b3)


# ----------------------------- pure-JAX reference -------------------------- #
def reference_forward(x, params, config):
    h1 = config["hidden_1"]
    p1 = config["maxout_1_pieces"]
    h2 = config["hidden_2"]
    p2 = config["maxout_2_pieces"]
    w1, b1, w2, b2, w3, b3 = params
    hp = jax.lax.Precision.HIGHEST

    z1 = jnp.dot(x, w1.T, precision=hp) + b1.T
    m1 = z1.reshape(-1, p1, h1).max(axis=1)
    z2 = jnp.dot(m1, w2.T, precision=hp) + b2.T
    m2 = z2.reshape(-1, p2, h2).max(axis=1)
    return jax.nn.sigmoid(jnp.dot(m2, w3.T, precision=hp) + b3.T)


if __name__ == "__main__":
    config = {
        "latent_size": 32,
        "hidden_1": 16,
        "maxout_1_pieces": 5,
        "hidden_2": 16,
        "maxout_2_pieces": 3,
        "dropout_1": 0.3,
        "dropout_2": 0.3,
    }

    key = jax.random.PRNGKey(0)
    k_x1, k_x2, k_p = jax.random.split(key, 3)
    params = init_params(k_p, config)

    # 1) small batch: single tile, single grid step (f32 path)
    x_small = jax.random.normal(k_x1, (8, config["latent_size"]), jnp.float32)
    out_small = jax.block_until_ready(discriminator_forward(x_small, params, config))
    ref_small = reference_forward(x_small, params, config)
    assert out_small.shape == (8, 1), out_small.shape
    assert jnp.allclose(out_small, ref_small, atol=1e-4, rtol=1e-4)

    # 2) larger batch: exercises padding, balanced (even) multi-tile grid,
    #    lane-dense output writeback across tiles.
    x_big = jax.random.normal(k_x2, (300, config["latent_size"]), jnp.float32)
    out_big = jax.block_until_ready(
        discriminator_forward(x_big, params, config, block_rows=128))
    ref_big = reference_forward(x_big, params, config)
    assert out_big.shape == (300, 1), out_big.shape
    assert jnp.allclose(out_big, ref_big, atol=1e-4, rtol=1e-4)

    # 3) bf16 streaming path (valid on v5e/v6e/v7x); f32 accumulate inside.
    out_bf16 = jax.block_until_ready(
        discriminator_forward(x_big, params, config, block_rows=128, use_bf16=True))
    assert out_bf16.shape == (300, 1), out_bf16.shape
    assert jnp.allclose(out_bf16, ref_big, atol=5e-2, rtol=5e-2)

    print("KERNEL_OK")
</pallas_src>

<mosaic_0001>
module attributes {stable_mosaic.version = 11 : i64} {
  func.func @_discriminator_kernel(%arg0: i32, %arg1: memref<128x32xf32, #tpu.memory_space<vmem>>, %arg2: memref<80x32xf32, #tpu.memory_space<vmem>>, %arg3: memref<80x1xf32, #tpu.memory_space<vmem>>, %arg4: memref<48x16xf32, #tpu.memory_space<vmem>>, %arg5: memref<48x1xf32, #tpu.memory_space<vmem>>, %arg6: memref<1x16xf32, #tpu.memory_space<vmem>>, %arg7: memref<1x1xf32, #tpu.memory_space<vmem>>, %arg8: memref<1x128xf32, #tpu.memory_space<vmem>>) attributes {dimension_semantics = [#tpu.dimension_semantics<parallel>], iteration_bounds = array<i64: 1>, scalar_prefetch = 0 : i64, scratch_operands = 0 : i64, tpu.core_type = #tpu.core_type<tc>, window_params = [{transform_indices = @transform_0, window_bounds = array<i64: 128, 32>}, {pipeline_mode = #tpu.pipeline_mode<synchronous>, transform_indices = @transform_1, window_bounds = array<i64: 80, 32>}, {pipeline_mode = #tpu.pipeline_mode<synchronous>, transform_indices = @transform_2, window_bounds = array<i64: 80, 1>}, {pipeline_mode = #tpu.pipeline_mode<synchronous>, transform_indices = @transform_3, window_bounds = array<i64: 48, 16>}, {pipeline_mode = #tpu.pipeline_mode<synchronous>, transform_indices = @transform_4, window_bounds = array<i64: 48, 1>}, {pipeline_mode = #tpu.pipeline_mode<synchronous>, transform_indices = @transform_5, window_bounds = array<i64: 1, 16>}, {pipeline_mode = #tpu.pipeline_mode<synchronous>, transform_indices = @transform_6, window_bounds = array<i64: 1, 1>}, {transform_indices = @transform_7, window_bounds = array<i64: 1, 128>}]} {
    %c0 = arith.constant 0 : index
    %c0_0 = arith.constant 0 : index
    %0 = vector.load %arg1[%c0, %c0_0] : memref<128x32xf32, #tpu.memory_space<vmem>>, vector<128x32xf32>
    %1 = tpu.transpose %0, [1, 0] : vector<128x32xf32> -> vector<32x128xf32>
    %c0_1 = arith.constant 0 : index
    %c0_2 = arith.constant 0 : index
    %2 = vector.load %arg2[%c0_1, %c0_2] : memref<80x32xf32, #tpu.memory_space<vmem>>, vector<80x32xf32>
    %cst = arith.constant dense<0.000000e+00> : vector<80x128xf32>
    %3 = tpu.matmul %2, %1, %cst {dimension_numbers = #tpu.dot_dimension_numbers<[1], [0], [0], [1], [0, 0, 1, 1], [], []>} : vector<80x32xf32>, vector<32x128xf32>, vector<80x128xf32> -> vector<80x128xf32>
    %c0_3 = arith.constant 0 : index
    %c0_4 = arith.constant 0 : index
    %4 = vector.load %arg3[%c0_3, %c0_4] : memref<80x1xf32, #tpu.memory_space<vmem>>, vector<80x1xf32>
    %5 = vector.broadcast %4 : vector<80x1xf32> to vector<80x128xf32>
    %6 = arith.addf %3, %5 : vector<80x128xf32>
    %7 = vector.extract_strided_slice %6 {offsets = [0, 0], sizes = [16, 128], strides = [1, 1]} : vector<80x128xf32> to vector<16x128xf32>
    %8 = vector.extract_strided_slice %6 {offsets = [16, 0], sizes = [16, 128], strides = [1, 1]} : vector<80x128xf32> to vector<16x128xf32>
    %9 = arith.maximumf %7, %8 : vector<16x128xf32>
    %10 = vector.extract_strided_slice %6 {offsets = [32, 0], sizes = [16, 128], strides = [1, 1]} : vector<80x128xf32> to vector<16x128xf32>
    %11 = arith.maximumf %9, %10 : vector<16x128xf32>
    %12 = vector.extract_strided_slice %6 {offsets = [48, 0], sizes = [16, 128], strides = [1, 1]} : vector<80x128xf32> to vector<16x128xf32>
    %13 = arith.maximumf %11, %12 : vector<16x128xf32>
    %14 = vector.extract_strided_slice %6 {offsets = [64, 0], sizes = [16, 128], strides = [1, 1]} : vector<80x128xf32> to vector<16x128xf32>
    %15 = arith.maximumf %13, %14 : vector<16x128xf32>
    %c0_5 = arith.constant 0 : index
    %c0_6 = arith.constant 0 : index
    %16 = vector.load %arg4[%c0_5, %c0_6] : memref<48x16xf32, #tpu.memory_space<vmem>>, vector<48x16xf32>
    %cst_7 = arith.constant dense<0.000000e+00> : vector<48x128xf32>
    %17 = tpu.matmul %16, %15, %cst_7 {dimension_numbers = #tpu.dot_dimension_numbers<[1], [0], [0], [1], [0, 0, 1, 1], [], []>} : vector<48x16xf32>, vector<16x128xf32>, vector<48x128xf32> -> vector<48x128xf32>
    %c0_8 = arith.constant 0 : index
    %c0_9 = arith.constant 0 : index
    %18 = vector.load %arg5[%c0_8, %c0_9] : memref<48x1xf32, #tpu.memory_space<vmem>>, vector<48x1xf32>
    %19 = vector.broadcast %18 : vector<48x1xf32> to vector<48x128xf32>
    %20 = arith.addf %17, %19 : vector<48x128xf32>
    %21 = vector.extract_strided_slice %20 {offsets = [0, 0], sizes = [16, 128], strides = [1, 1]} : vector<48x128xf32> to vector<16x128xf32>
    %22 = vector.extract_strided_slice %20 {offsets = [16, 0], sizes = [16, 128], strides = [1, 1]} : vector<48x128xf32> to vector<16x128xf32>
    %23 = arith.maximumf %21, %22 : vector<16x128xf32>
    %24 = vector.extract_strided_slice %20 {offsets = [32, 0], sizes = [16, 128], strides = [1, 1]} : vector<48x128xf32> to vector<16x128xf32>
    %25 = arith.maximumf %23, %24 : vector<16x128xf32>
    %c0_10 = arith.constant 0 : index
    %c0_11 = arith.constant 0 : index
    %26 = vector.load %arg6[%c0_10, %c0_11] : memref<1x16xf32, #tpu.memory_space<vmem>>, vector<1x16xf32>
    %cst_12 = arith.constant dense<0.000000e+00> : vector<1x128xf32>
    %27 = tpu.matmul %26, %25, %cst_12 {dimension_numbers = #tpu.dot_dimension_numbers<[1], [0], [0], [1], [0, 0, 1, 1], [], []>} : vector<1x16xf32>, vector<16x128xf32>, vector<1x128xf32> -> vector<1x128xf32>
    %c0_13 = arith.constant 0 : index
    %c0_14 = arith.constant 0 : index
    %28 = vector.load %arg7[%c0_13, %c0_14] : memref<1x1xf32, #tpu.memory_space<vmem>>, vector<1x1xf32>
    %29 = vector.broadcast %28 : vector<1x1xf32> to vector<1x128xf32>
    %30 = arith.addf %27, %29 : vector<1x128xf32>
    %31 = arith.negf %30 : vector<1x128xf32>
    %32 = math.exp %31 : vector<1x128xf32>
    %cst_15 = arith.constant 1.000000e+00 : f32
    %33 = vector.broadcast %cst_15 : f32 to vector<1x128xf32>
    %34 = arith.addf %33, %32 : vector<1x128xf32>
    %35 = arith.divf %33, %34 : vector<1x128xf32>
    %c0_16 = arith.constant 0 : index
    %c0_17 = arith.constant 0 : index
    %36 = vector.load %arg8[%c0_16, %c0_17] : memref<1x128xf32, #tpu.memory_space<vmem>>, vector<1x128xf32>
    tpu.vector_store %arg8[%c0_16, %c0_17], %35 {strides = array<i32>} : memref<1x128xf32, #tpu.memory_space<vmem>>, vector<1x128xf32>,
    return
  }
  func.func @transform_0(%arg0: i32) -> (i32, i32) {
    %c0_i32 = arith.constant 0 : i32
    %c0_i32_0 = arith.constant 0 : i32
    return %arg0, %c0_i32 : i32, i32
  }
  func.func @transform_1(%arg0: i32) -> (i32, i32) {
    %c0_i32 = arith.constant 0 : i32
    %c0_i32_0 = arith.constant 0 : i32
    %c0_i32_1 = arith.constant 0 : i32
    return %c0_i32, %c0_i32_0 : i32, i32
  }
  func.func @transform_2(%arg0: i32) -> (i32, i32) {
    %c0_i32 = arith.constant 0 : i32
    %c0_i32_0 = arith.constant 0 : i32
    %c0_i32_1 = arith.constant 0 : i32
    return %c0_i32, %c0_i32_0 : i32, i32
  }
  func.func @transform_3(%arg0: i32) -> (i32, i32) {
    %c0_i32 = arith.constant 0 : i32
    %c0_i32_0 = arith.constant 0 : i32
    %c0_i32_1 = arith.constant 0 : i32
    return %c0_i32, %c0_i32_0 : i32, i32
  }
  func.func @transform_4(%arg0: i32) -> (i32, i32) {
    %c0_i32 = arith.constant 0 : i32
    %c0_i32_0 = arith.constant 0 : i32
    %c0_i32_1 = arith.constant 0 : i32
    return %c0_i32, %c0_i32_0 : i32, i32
  }
  func.func @transform_5(%arg0: i32) -> (i32, i32) {
    %c0_i32 = arith.constant 0 : i32
    %c0_i32_0 = arith.constant 0 : i32
    %c0_i32_1 = arith.constant 0 : i32
    return %c0_i32, %c0_i32_0 : i32, i32
  }
  func.func @transform_6(%arg0: i32) -> (i32, i32) {
    %c0_i32 = arith.constant 0 : i32
    %c0_i32_0 = arith.constant 0 : i32
    %c0_i32_1 = arith.constant 0 : i32
    return %c0_i32, %c0_i32_0 : i32, i32
  }
  func.func @transform_7(%arg0: i32) -> (i32, i32) {
    %c0_i32 = arith.constant 0 : i32
    %c0_i32_0 = arith.constant 0 : i32
    return %c0_i32, %arg0 : i32, i32
  }
}

</mosaic_0001>

<bundles_post_ra>
// kernel: tpu_custom_call.1
= control target key start
LH: loop header
LB: loop body
LE: loop exit
PB: predicated region body
PF: predicated region fallthrough
CT: control target
= control target key end

     0   :  { %s1072_s0 = inlined_call_operand.vmem [shape: f32[128,32], index: 0, kind: input, shape index: {}]   ;;  %s1073_s1 = inlined_call_operand.vmem [shape: f32[80,32], index: 1, kind: input, shape index: {}]   ;;  %s1074_s2 = inlined_call_operand.vmem [shape: f32[80,1], index: 2, kind: input, shape index: {}]   ;;  %s1075_s3 = inlined_call_operand.vmem [shape: f32[48,16], index: 3, kind: input, shape index: {}]   ;;  %s1076_s4 = inlined_call_operand.vmem [shape: f32[48,1], index: 4, kind: input, shape index: {}]   ;;  %s1077_s5 = inlined_call_operand.vmem [shape: f32[1,16], index: 5, kind: input, shape index: {}]   ;;  %s1078_s6 = inlined_call_operand.<no memory space> [shape: f32[1,1], index: 6, kind: input, shape index: {}]   ;;  %s1079_s7 = inlined_call_operand.hbm [shape: f32[1,128], index: 7, kind: output, shape index: {}]  }
   0x1   :  { %v12_v0 = vstv %s1078_s6 }
   0x2   :  { %13 = vst [vmem:[#allocation2] sm:$0x1] %v12_v0 }
   0x3   :  { %v29_v1 = vld [vmem:[%s1072_s0] sm:$0xff]  ;;  %v30_v2 = vld [vmem:[%s1072_s0 + $0x8] sm:$0xff]  ;;  %vm115_vm0 = vcmask 261120   ;;  %v31_v3 = vld [vmem:[%s1072_s0 + $0x10] sm:$0xff]  ;;  %v810_v7 = vmov 0  }
   0x4   :  { %v720_v4 = vpack.c.bf16 %v30_v2, %v29_v1  ;;  %vm869_vm1 = vmpackc.low %vm115_vm0, %vm115_vm0  ;;  %v32_v6 = vld [vmem:[%s1072_s0 + $0x18] sm:$0xff]  ;;  %780 = vset.pattern.permute.xlu0 %v810_v7  ;;  %781 = vset.pattern.permute.xlu1 %v810_v7  ;;  %v45_v9 = vld [vmem:[%s1073_s1] sm:$0xff] }
   0x5   :  { %v726_v8 = vpack.c.bf16 %v32_v6, %v31_v3  ;;  %v33_v10 = vld [vmem:[%s1072_s0 + $0x20] sm:$0xff]  ;;  %v34_v11 = vld [vmem:[%s1072_s0 + $0x28] sm:$0xff]  ;;  %685 = vmatprep.mubr.msk.f32.mxu0 %vm115_vm0, %v45_v9  ;;  %v57_v14 = vld [vmem:[%s1074_s2 + $0x10] sm:$0xff] }
   0x6   :  { %722 = vmatprep.subr.msk.bf16.mxu0 %vm869_vm1, %v720_v4  ;;  %v732_v12 = vpack.c.bf16 %v34_v11, %v33_v10  ;;  %v55_v13 = vld [vmem:[%s1074_s2] sm:$0xff]  ;;  %77 = vperm.xlu1 %781, %v57_v14   ;;  %v56_v15 = vld [vmem:[%s1074_s2 + $0x8] sm:$0xff]  ;;  %v58_v16 = vld [vmem:[%s1074_s2 + $0x18] sm:$0xff] }
   0x7   :  { %725 = vmatpush3.bf16.xpose.msk.msra.mxu0 %vm869_vm1, %v720_v4  ;;  %67 = vperm.xlu0 %780, %v55_v13   ;;  %v35_v17 = vld [vmem:[%s1072_s0 + $0x30] sm:$0xff]  ;;  %v36_v18 = vld [vmem:[%s1072_s0 + $0x38] sm:$0xff] }
   0x8   :  { %728 = vmatprep.subr.msk.bf16.mxu0 %vm869_vm1, %v726_v8 }
   0xa   :  { %82 = vperm.xlu1 %781, %v58_v16  }
   0xb   :  { %72 = vperm.xlu0 %780, %v56_v15  }
   0xf   :  { %731 = vmatpush3.bf16.xpose.msk.msra.mxu0 %vm869_vm1, %v726_v8 }
  0x10   :  { %734 = vmatprep.subr.msk.bf16.mxu0 %vm869_vm1, %v732_v12 }
  0x11   :  { %14 = vsyncpa [#allocation4], 0  ;;  %v59_v19 = vld [vmem:[%s1074_s2 + $0x20] sm:$0xff]  ;;  %v60_v20 = vld [vmem:[%s1074_s2 + $0x28] sm:$0xff]  ;;  %v738_v21 = vpack.c.bf16 %v36_v18, %v35_v17  ;;  %vm359_vm2 = vcmask 130048   ;;  %vm812_vm3 = vmmov 0  }
  0x12   :  { %87 = vperm.xlu0 %780, %v59_v19   ;;  %92 = vperm.xlu1 %781, %v60_v20   ;;  %v61_v22 = vld [vmem:[%s1074_s2 + $0x30] sm:$0xff]  ;;  %v62_v23 = vld [vmem:[%s1074_s2 + $0x38] sm:$0xff]  ;;  %v37_v24 = vld [vmem:[%s1072_s0 + $0x40] sm:$0xff]  ;;  %s814_s21 = smov [#allocation3]  }
  0x13   :  { %v38_v25 = vld [vmem:[%s1072_s0 + $0x48] sm:$0xff]  ;;  %v63_v26 = vld [vmem:[%s1074_s2 + $0x40] sm:$0xff]  ;;  %v39_v31 = vld [vmem:[%s1072_s0 + $0x50] sm:$0xff] }
  0x14   :  { %v64_v27 = vld [vmem:[%s1074_s2 + $0x48] sm:$0xff]  ;;  %v744_v28 = vpack.c.bf16 %v38_v25, %v37_v24  ;;  %v323_v29 = vld [vmem:[%s1076_s4] sm:$0xff]  ;;  %v40_v32 = vld [vmem:[%s1072_s0 + $0x58] sm:$0xff] }
  0x15   :  { %v324_v30 = vld [vmem:[%s1076_s4 + $0x8] sm:$0xff]  ;;  %v325_v33 = vld [vmem:[%s1076_s4 + $0x10] sm:$0xff]  ;;  %v326_v34 = vld [vmem:[%s1076_s4 + $0x18] sm:$0xff]  ;;  %v750_v35 = vpack.c.bf16 %v40_v32, %v39_v31 }
  0x16   :  { %97 = vperm.xlu0 %780, %v61_v22   ;;  %102 = vperm.xlu1 %781, %v62_v23   ;;  %v327_v36 = vld [vmem:[%s1076_s4 + $0x20] sm:$0xff]  ;;  %v328_v37 = vld [vmem:[%s1076_s4 + $0x28] sm:$0xff]  ;;  %v43_v42 = vld [vmem:[%s1072_s0 + $0x70] sm:$0xff] }
  0x17   :  { %737 = vmatpush3.bf16.xpose.msk.msra.mxu0 %vm869_vm1, %v732_v12  ;;  %v41_v38 = vld [vmem:[%s1072_s0 + $0x60] sm:$0xff]  ;;  %v42_v39 = vld [vmem:[%s1072_s0 + $0x68] sm:$0xff]  ;;  %v44_v43 = vld [vmem:[%s1072_s0 + $0x78] sm:$0xff]  ;;  %s574_s0 = sshll.u32 %s814_s21, 4  ;;  %s575_s0 = int_to_ptr.vmem [resolvable:$true] %s574_s0 }
  0x18   :  { %740 = vmatprep.subr.msk.bf16.mxu0 %vm869_vm1, %v738_v21  ;;  %v478_v40 = vld [vmem:[#allocation2] sm:$0x1]  ;;  %v756_v41 = vpack.c.bf16 %v42_v39, %v41_v38  ;;  %v762_v44 = vpack.c.bf16 %v44_v43, %v43_v42  ;;  %v46_v45 = vld [vmem:[%s1073_s1 + $0x8] sm:$0xff]  ;;  %v47_v46 = vld [vmem:[%s1073_s1 + $0x10] sm:$0xff]  ;;  %s790_s22 = scalar_lea.vmem %s575_s0, 32  ;;  %p791_p1 = scmp.lt.s32.totalorder %s575_s0, %s575_s0 }
  0x19   :  { %v48_v47 = vld [vmem:[%s1073_s1 + $0x18] sm:$0xff]  ;;  %v49_v48 = vld [vmem:[%s1073_s1 + $0x20] sm:$0xff]  ;;  %v50_v49 = vld [vmem:[%s1073_s1 + $0x28] sm:$0xff] }
  0x1a   :  { %107 = vperm.xlu0 %780, %v63_v26   ;;  %112 = vperm.xlu1 %781, %v64_v27   ;;  %v51_v50 = vld [vmem:[%s1073_s1 + $0x30] sm:$0xff]  ;;  %v52_v51 = vld [vmem:[%s1073_s1 + $0x38] sm:$0xff]  ;;  %v53_v52 = vld [vmem:[%s1073_s1 + $0x40] sm:$0xff] }
  0x1b   :  { %v54_v53 = vld [vmem:[%s1073_s1 + $0x48] sm:$0xff]  ;;  %v317_v54 = vld [vmem:[%s1075_s3] sm:$0xff]  ;;  %v319_v31 = vld [vmem:[%s1075_s3 + $0x10] sm:$0xff] }
  0x1c   :  { %704 = vmatprep.mubr.msk.f32.mxu1 %vm359_vm2, %v317_v54  ;;  %v320_v32 = vld [vmem:[%s1075_s3 + $0x18] sm:$0xff] }
  0x1e   :  { %331 = vperm.xlu0 %780, %v323_v29   ;;  %336 = vperm.xlu1 %781, %v324_v30   ;;  %v318_v30 = vld [vmem:[%s1075_s3 + $0x8] sm:$0xff] }
  0x1f   :  { %743 = vmatpush3.bf16.xpose.msk.msra.mxu0 %vm869_vm1, %v738_v21 }
  0x20   :  { %746 = vmatprep.subr.msk.bf16.mxu0 %vm869_vm1, %v744_v28 }
  0x22   :  { %341 = vperm.xlu0 %780, %v325_v33   ;;  %346 = vperm.xlu1 %781, %v326_v34   ;;  %v321_v33 = vld [vmem:[%s1075_s3 + $0x20] sm:$0xff]  ;;  %v322_v34 = vld [vmem:[%s1075_s3 + $0x28] sm:$0xff] }
  0x26   :  { %351 = vperm.xlu0 %780, %v327_v36   ;;  %356 = vperm.xlu1 %781, %v328_v37   ;;  %v813_v36 = vmov 0.0  }
  0x27   :  { %749 = vmatpush3.bf16.xpose.msk.msra.mxu0 %vm869_vm1, %v744_v28 }
  0x28   :  { %752 = vmatprep.subr.msk.bf16.mxu0 %vm869_vm1, %v750_v35 }
  0x2a   :  { %481 = vperm.xlu0 %780, %v478_v40  }
  0x2f   :  { %755 = vmatpush3.bf16.xpose.msk.msra.mxu0 %vm869_vm1, %v750_v35  ;;  %v811_v35 = vmov 0.0|0.0  }
  0x30   :  { %758 = vmatprep.subr.msk.bf16.mxu0 %vm869_vm1, %v756_v41 }
  0x37   :  { %761 = vmatpush3.bf16.xpose.msk.msra.mxu0 %vm869_vm1, %v756_v41 }
  0x38   :  { %764 = vmatprep.subr.msk.bf16.mxu0 %vm869_vm1, %v762_v44 }
  0x3f   :  { %767 = vmatpush3.bf16.xpose.msk.msra.mxu0 %vm869_vm1, %v762_v44 }
  0x46   :  { %686 = vmatmul.mubr.msk.f32.vlgmr.msra.gmra.mrb[0].mxu0 %vm115_vm0, %v46_v45 }
  0x47   :  { %688 = vmatprep.mubr.msk.f32.mxu0 %vm115_vm0, %v47_v46 }
  0x4a   :  { %689 = vmatmul.mubr.msk.f32.gmra.mrb[2].mxu0 %vm115_vm0, %v48_v47 }
  0x4b   :  { %691 = vmatprep.mubr.msk.f32.mxu0 %vm115_vm0, %v49_v48 }
  0x4e   :  { %692 = vmatmul.mubr.msk.f32.gmra.mrb[4].mxu0 %vm115_vm0, %v50_v49 }
  0x4f   :  { %694 = vmatprep.mubr.msk.f32.mxu0 %vm115_vm0, %v51_v50 }
  0x52   :  { %695 = vmatmul.mubr.msk.f32.gmra.mrb[6].mxu0 %vm115_vm0, %v52_v51 }
  0x53   :  { %697 = vmatprep.mubr.msk.f32.mxu0 %vm115_vm0, %v53_v52 }
  0x56   :  { %698 = vmatmul.mubr.msk.f32.gmra.mrb[8].mxu0 %vm115_vm0, %v54_v53 }
  0x85   :  { %v78_v55 = vpop.permute.xlu1 %77 }
  0x86   :  { %v68_v56 = vpop.permute.xlu0 %67 }
  0x89   :  { %v83_v57 = vpop.permute.xlu1 %82 }
  0x8a   :  { %v73_v58 = vpop.permute.xlu0 %72 }
  0x91   :  { %v93_v61 = vpop.permute.xlu1 %92  ;;  %v88_v63 = vpop.permute.xlu0 %87 }
  0x95   :  { %v103_v10 = vpop.permute.xlu1 %102  ;;  %v98_v12 = vpop.permute.xlu0 %97 }
  0x99   :  { %v113_v20 = vpop.permute.xlu1 %112  ;;  %v108_v23 = vpop.permute.xlu0 %107 }
  0x9d   :  { %v337_v37 = vpop.permute.xlu1 %336  ;;  %v332_v38 = vpop.permute.xlu0 %331 }
  0xa1   :  { %v347_v41 = vpop.permute.xlu1 %346  ;;  %v342_v42 = vpop.permute.xlu0 %341 }
  0xa5   :  { %v357_v50 = vpop.permute.xlu1 %356  ;;  %v352_v53 = vpop.permute.xlu0 %351 }
 0x119   :  { %v687_v59 = vpop.f32.mrb[0].mxu0 }
 0x11a   :  { %v260_v60 = vpop.f32.mrb[1].mxu0  ;;  %v266_v0 = vadd.f32 %v687_v59, %v73_v58 }
 0x11b   :  { %v261_v3 = vadd.f32 %v260_v60, %v68_v56  ;;  %v477_v60 = vld [vmem:[%s1077_s5] sm:$0x1]  ;;  %s786_s5 = scalar_lea.vmem %s575_s0, 16 }
 0x11c   :  { %p787_p0 = scmp.ne.s32.totalorder %s575_s0, %s786_s5  ;;  %p792_p2 = scmp.lt.s32.totalorder %s790_s22, %s786_s5 }
 0x11d   :  { %v690_v62 = vpop.f32.mrb[2].mxu0 }
 0x11e   :  { %v276_v1 = vadd.f32 %v690_v62, %v83_v57  ;;  %v270_v2 = vpop.f32.mrb[3].mxu0  ;;  %p793_p3 = por %p792_p2, %p791_p1 }
 0x11f   :  { %v271_v4 = vadd.f32 %v270_v2, %v78_v55 }
 0x120   :  { %v310_v5 = vmax.f32 %v266_v0, %v276_v1  ;;  %v482_v0 = vpop.permute.xlu0 %481  ;;  %p794_p4 = pnand %p793_p3, %p787_p0 }
 0x121   :  { %v309_v6 = vmax.f32 %v261_v3, %v271_v4  ;;  %v693_v7 = vpop.f32.mrb[4].mxu0 }
 0x122   :  { %v286_v8 = vadd.f32 %v693_v7, %v93_v61  ;;  %v280_v9 = vpop.f32.mrb[5].mxu0  ;;  %v484_v61 = vlaneseq }
 0x123   :  { %v281_v11 = vadd.f32 %v280_v9, %v88_v63 }
 0x124   :  { %v312_v13 = vmax.f32 %v310_v5, %v286_v8  ;;  %v485_v62 = vshrl.u32 %v484_v61, 7 }
 0x125   :  { %v311_v14 = vmax.f32 %v309_v6, %v281_v11  ;;  %v696_v15 = vpop.f32.mrb[6].mxu0 }
 0x126   :  { %v296_v16 = vadd.f32 %v696_v15, %v103_v10  ;;  %v290_v17 = vpop.f32.mrb[7].mxu0  ;;  %v486_v63 = vsub.s32 0, %v485_v62 }
 0x127   :  { %v291_v18 = vadd.f32 %v290_v17, %v98_v12 }
 0x128   :  { %v314_v19 = vmax.f32 %v312_v13, %v296_v16  ;;  %v487_v1 = vrot.slane %v482_v0, %v486_v63 }
 0x129   :  { %v313_v21 = vmax.f32 %v311_v14, %v291_v18  ;;  %v699_v22 = vpop.f32.mrb[8].mxu0 }
 0x12a   :  { %v306_v24 = vadd.f32 %v699_v22, %v113_v20  ;;  %v300_v25 = vpop.f32.mrb[9].mxu0 }
 0x12b   :  { %v301_v26 = vadd.f32 %v300_v25, %v108_v23 }
 0x12c   :  { %v316_v27 = vmax.f32 %v314_v19, %v306_v24 }
 0x12d   :  { %v315_v28 = vmax.f32 %v313_v21, %v301_v26 }
 0x12f   :  { %v768_v29 = vpack.c.bf16 %v316_v27, %v315_v28 }
 0x131   :  { %769 = vmatprep.subr.bf16.mxu1 %v768_v29 }
 0x132   :  { %771 = vmatpush3.bf16.msra.mxu1 %v768_v29 }
 0x133   :  { %772 = vmatprep.subr.bf16.mxu1 %v811_v35 }
 0x135   :  { %705 = vmatmul.mubr.msk.f32.vlgmr.msra.gmra.mrb[0].mxu1 %vm359_vm2, %v318_v30 }
 0x136   :  { %707 = vmatprep.mubr.msk.f32.mxu1 %vm359_vm2, %v319_v31 }
 0x139   :  { %708 = vmatmul.mubr.msk.f32.gmra.mrb[2].mxu1 %vm359_vm2, %v320_v32 }
 0x13a   :  { %710 = vmatprep.mubr.msk.f32.mxu1 %vm359_vm2, %v321_v33 }
 0x13d   :  { %711 = vmatmul.mubr.msk.f32.gmra.mrb[4].mxu1 %vm359_vm2, %v322_v34 }
 0x13e   :  { %717 = vmatprep.mubr.msk.f32.mxu1 %vm812_vm3, %v813_v36 }
 0x208   :  { %v706_v39 = vpop.f32.mrb[0].mxu1 }
 0x209   :  { %v444_v40 = vpop.f32.mrb[1].mxu1  ;;  %v450_v44 = vadd.f32 %v706_v39, %v337_v37 }
 0x20a   :  { %v445_v47 = vadd.f32 %v444_v40, %v332_v38 }
 0x20c   :  { %v709_v43 = vpop.f32.mrb[2].mxu1 }
 0x20d   :  { %v460_v45 = vadd.f32 %v709_v43, %v347_v41  ;;  %v454_v46 = vpop.f32.mrb[3].mxu1 }
 0x20e   :  { %v455_v48 = vadd.f32 %v454_v46, %v342_v42 }
 0x20f   :  { %v474_v49 = vmax.f32 %v450_v44, %v460_v45 }
 0x210   :  { %v473_v51 = vmax.f32 %v445_v47, %v455_v48  ;;  %v712_v52 = vpop.f32.mrb[4].mxu1 }
 0x211   :  { %v470_v54 = vadd.f32 %v712_v52, %v357_v50  ;;  %v464_v55 = vpop.f32.mrb[5].mxu1 }
 0x212   :  { %v465_v56 = vadd.f32 %v464_v55, %v352_v53 }
 0x213   :  { %v476_v57 = vmax.f32 %v474_v49, %v470_v54 }
 0x214   :  { %v475_v58 = vmax.f32 %v473_v51, %v465_v56 }
 0x216   :  { %v773_v59 = vpack.c.bf16 %v476_v57, %v475_v58 }
 0x218   :  { %774 = vmatpush3.bf16.msra.mxu1 %v773_v59 }
 0x21b   :  { %718 = vmatmul.mubr.msk.f32.vlgmr.msra.gmra.mrb[6].mxu1 %vm359_vm2, %v477_v60 }
 0x2ee   :  { %v557_v2 = vpop.f32.mrb[6].mxu1 }
 0x2ef   :  { %v558_v3 = vadd.f32 %v557_v2, %v487_v1  ;;  %v719_v4 = vpop.f32.mrb[7].mxu1 }
 0x2f1   :  { %v615_v5 = vmul.f32 -1.442695, %v558_v3 }
 0x2f3   :  { %782 = vpow2.f32 %v615_v5 }
 0x2fd   :  { %v783_v6 = vpop.eup %782 }
 0x2fe   :  { %v564_v7 = vadd.f32 1.0, %v783_v6 }
 0x300   :  { %784 = vrcp.f32 %v564_v7 }
 0x30a   :  { %v785_v8 = vpop.eup %784 }
 0x30b   :  { %567 = vst [vmem:[#allocation3] sm:$0x1] %v785_v8 }
 0x30c   :  { %797 = shalt.err (!%p794_p4)
}
 0x30d   :  { %s798_s25 = scalar_lea.hbm %s1079_s7, 16 }
 0x30e   :  { %p799_p5 = scmp.ne.s32.totalorder %s1079_s7, %s798_s25  ;;  %p802_p6 = scmp.lt.u32.totalorder %s798_s25, %s1079_s7 }
 0x310   :  { %p804_p7 = pnand %p802_p6, %p799_p5 }
 0x312   :  { %807 = shalt.err (!%p804_p7)
}
 0x313   :  { %577 = dma.vmem_to_hbm [thread:$0]  %s575_s0, 16, %s1079_s7, [#allocation4]  }
 0x314   :  { %808 = dma.done.wait [#allocation4], 16  }
 0x315   :  { %809 = vsyncadd [#allocation4], 4294967280 }
 0x316   :  { %581 = vsyncpa [#allocation4], 1 }

</bundles_post_ra>
